<compile_context>
chip_gen: v5e
topology: v5e:2x2
jax: 0.10.0
libtpu: 0.0.40
codegen_flags: <defaults>
</compile_context>

<pallas_src>
import jax
import jax.numpy as jnp
from jax.experimental import pallas as pl
from jax.experimental.pallas import tpu as pltpu

# ----------------------------- config (small) -------------------------------
B = 2            # batch
S = 8            # sequence length
H = 32           # hidden size
LN_EPS = 1e-12

PAD_LANES = 128                          # lane-dense param-slab width
PAD_ROWS = ((H + 1 + 7) // 8) * 8        # 40: H weight rows + 1 vector row, 8-aligned


# ------------------------------- kernel --------------------------------------
def bert_self_output_kernel(hs_ref, res_ref, p_ref, out_ref):
    """One grid step processes a (tm, H) row tile entirely in VMEM.

    p_ref layout (single packed slab, one DMA):
      p_ref[0:H, 0:H]        = dense weight W (in, out)
      p_ref[H,   0:H]        = dense bias
      p_ref[H,   H:2H]       = LayerNorm gamma
      p_ref[H,   2H:3H]      = LayerNorm beta
    """
    hs = hs_ref[...]                       # (tm, H) hidden_states rows
    res = res_ref[...]                     # (tm, H) residual input_tensor rows

    w = p_ref[0:H, 0:H]                    # (H, H)
    bias = p_ref[H:H + 1, 0:H]             # (1, H)
    gamma = p_ref[H:H + 1, H:2 * H]        # (1, H)
    beta = p_ref[H:H + 1, 2 * H:3 * H]     # (1, H)

    # dense: single MXU push, f32 accumulation.
    # For real BERT sizes cast hs / w to bf16 here and keep preferred f32 accumulation.
    y = jnp.dot(hs, w, preferred_element_type=jnp.float32) + bias

    # dropout: identity at inference.
    # TODO(synk): training-mode dropout (pltpu.prng_seed + pltpu.prng_random_bits) not implemented.

    # residual + BertLayerNorm (biased variance, eps inside sqrt), exact f32 math.
    x = y + res
    u = jnp.mean(x, axis=-1, keepdims=True)
    s = jnp.mean((x - u) ** 2, axis=-1, keepdims=True)
    out_ref[...] = ((x - u) * jax.lax.rsqrt(s + LN_EPS) * gamma + beta).astype(out_ref.dtype)


# ------------------------------ wrapper ---------------------------------------
def pack_params(w, b, gamma, beta):
    """Pack the 4 parameter arrays into one lane-dense (PAD_ROWS, 128) slab."""
    slab = jnp.zeros((PAD_ROWS, PAD_LANES), jnp.float32)
    slab = slab.at[0:H, 0:H].set(w)
    slab = slab.at[H, 0:H].set(b)
    slab = slab.at[H, H:2 * H].set(gamma)
    slab = slab.at[H, 2 * H:3 * H].set(beta)
    return slab


def bert_self_output(hidden_states, input_tensor, w, b, gamma, beta, row_tile=None):
    """hidden_states, input_tensor: (B, S, H) f32.  Returns (B, S, H) f32."""
    Bq, Sq, Hq = hidden_states.shape
    M = Bq * Sq
    tm = M if row_tile is None else row_tile     # toy size: whole slab, grid collapses to 1 step

    slab = pack_params(w, b, gamma, beta)
    hs2d = hidden_states.reshape(M, Hq)          # flatten batch in the wrapper (free)
    in2d = input_tensor.reshape(M, Hq)

    out2d = pl.pallas_call(
        bert_self_output_kernel,
        out_shape=jax.ShapeDtypeStruct((M, Hq), jnp.float32),
        grid_spec=pltpu.PrefetchScalarGridSpec(
            num_scalar_prefetch=0,
            grid=(M // tm,),
            in_specs=[
                pl.BlockSpec((tm, Hq), lambda i: (i, 0)),                 # hidden_states rows
                pl.BlockSpec((tm, Hq), lambda i: (i, 0)),                 # residual rows
                pl.BlockSpec((PAD_ROWS, PAD_LANES), lambda i: (0, 0)),    # packed params (1 DMA)
            ],
            out_specs=pl.BlockSpec((tm, Hq), lambda i: (i, 0)),
        ),
        # Row tiles are independent -> "parallel"; with grid=(1,) at toy size this is a
        # single step on one TensorCore (no cross-core split of sub-microsecond work).
        # NOTE: for real BERT shapes also set vmem_limit_bytes here (v7x: 64 MiB physical).
        compiler_params=pltpu.CompilerParams(dimension_semantics=("parallel",)),
    )(hs2d, in2d, slab)

    return out2d.reshape(Bq, Sq, Hq)


# --------------------------- pure-JAX reference ------------------------------
def bert_self_output_ref(hidden_states, input_tensor, w, b, gamma, beta):
    y = hidden_states @ w + b                     # dense
    x = y + input_tensor                          # dropout(eval)=identity, then residual
    u = jnp.mean(x, axis=-1, keepdims=True)
    s = jnp.mean((x - u) ** 2, axis=-1, keepdims=True)
    return (x - u) / jnp.sqrt(s + LN_EPS) * gamma + beta


# ------------------------------- params --------------------------------------
def make_params(key):
    kw, kb, kg, kbe = jax.random.split(key, 4)
    w = (0.02 * jax.random.normal(kw, (H, H))).astype(jnp.float32)
    b = (0.02 * jax.random.normal(kb, (H,))).astype(jnp.float32)
    gamma = (1.0 + 0.1 * jax.random.normal(kg, (H,))).astype(jnp.float32)
    beta = (0.02 * jax.random.normal(kbe, (H,))).astype(jnp.float32)
    return w, b, gamma, beta


if __name__ == "__main__":
    key = jax.random.PRNGKey(0)
    k_h, k_r, k_p = jax.random.split(key, 3)

    hidden_states = jax.random.normal(k_h, (B, S, H), dtype=jnp.float32)
    input_tensor = jax.random.normal(k_r, (B, S, H), dtype=jnp.float32)
    params = make_params(k_p)

    out = bert_self_output(hidden_states, input_tensor, *params)
    out = jax.block_until_ready(out)

    ref = bert_self_output_ref(hidden_states, input_tensor, *params)
    assert out.shape == (B, S, H)
    err = float(jnp.max(jnp.abs(out - ref)))
    assert jnp.allclose(out, ref, atol=1e-4, rtol=1e-4), f"max abs err {err}"

    print("KERNEL_OK")
</pallas_src>

<mosaic_0001>
module attributes {stable_mosaic.version = 11 : i64} {
  func.func @bert_self_output_kernel(%arg0: i32, %arg1: memref<16x32xf32, #tpu.memory_space<vmem>>, %arg2: memref<16x32xf32, #tpu.memory_space<vmem>>, %arg3: memref<40x128xf32, #tpu.memory_space<vmem>>, %arg4: memref<16x32xf32, #tpu.memory_space<vmem>>) attributes {dimension_semantics = [#tpu.dimension_semantics<parallel>], iteration_bounds = array<i64: 1>, scalar_prefetch = 0 : i64, scratch_operands = 0 : i64, tpu.core_type = #tpu.core_type<tc>, window_params = [{transform_indices = @transform_0, window_bounds = array<i64: 16, 32>}, {transform_indices = @transform_1, window_bounds = array<i64: 16, 32>}, {pipeline_mode = #tpu.pipeline_mode<synchronous>, transform_indices = @transform_2, window_bounds = array<i64: 40, 128>}, {transform_indices = @transform_3, window_bounds = array<i64: 16, 32>}]} {
    %c0 = arith.constant 0 : index
    %c0_0 = arith.constant 0 : index
    %0 = vector.load %arg1[%c0, %c0_0] : memref<16x32xf32, #tpu.memory_space<vmem>>, vector<16x32xf32>
    %c0_1 = arith.constant 0 : index
    %c0_2 = arith.constant 0 : index
    %1 = vector.load %arg2[%c0_1, %c0_2] : memref<16x32xf32, #tpu.memory_space<vmem>>, vector<16x32xf32>
    %c0_3 = arith.constant 0 : index
    %c0_4 = arith.constant 0 : index
    %2 = vector.load %arg3[%c0_3, %c0_4] : memref<40x128xf32, #tpu.memory_space<vmem>>, vector<32x32xf32>
    %c32 = arith.constant 32 : index
    %c0_5 = arith.constant 0 : index
    %3 = vector.load %arg3[%c32, %c0_5] : memref<40x128xf32, #tpu.memory_space<vmem>>, vector<1x32xf32>
    %c32_6 = arith.constant 32 : index
    %c32_7 = arith.constant 32 : index
    %4 = vector.load %arg3[%c32_6, %c32_7] : memref<40x128xf32, #tpu.memory_space<vmem>>, vector<1x32xf32>
    %c32_8 = arith.constant 32 : index
    %c64 = arith.constant 64 : index
    %5 = vector.load %arg3[%c32_8, %c64] : memref<40x128xf32, #tpu.memory_space<vmem>>, vector<1x32xf32>
    %cst = arith.constant dense<0.000000e+00> : vector<16x32xf32>
    %6 = tpu.matmul %0, %2, %cst {dimension_numbers = #tpu.dot_dimension_numbers<[1], [0], [0], [1], [0, 0, 1, 1], [], []>} : vector<16x32xf32>, vector<32x32xf32>, vector<16x32xf32> -> vector<16x32xf32>
    %7 = vector.broadcast %3 : vector<1x32xf32> to vector<16x32xf32>
    %8 = arith.addf %6, %7 : vector<16x32xf32>
    %9 = arith.addf %8, %1 : vector<16x32xf32>
    %cst_9 = arith.constant dense<0.000000e+00> : vector<16xf32>
    %10 = vector.multi_reduction <add>, %9, %cst_9 [1] : vector<16x32xf32> to vector<16xf32>
    %11 = vector.shape_cast %10 : vector<16xf32> to vector<16x1xf32>
    %cst_10 = arith.constant 3.200000e+01 : f32
    %12 = vector.broadcast %cst_10 : f32 to vector<16x1xf32>
    %13 = arith.divf %11, %12 : vector<16x1xf32>
    %14 = vector.broadcast %13 : vector<16x1xf32> to vector<16x32xf32>
    %15 = arith.subf %9, %14 : vector<16x32xf32>
    %16 = arith.mulf %15, %15 : vector<16x32xf32>
    %cst_11 = arith.constant dense<0.000000e+00> : vector<16xf32>
    %17 = vector.multi_reduction <add>, %16, %cst_11 [1] : vector<16x32xf32> to vector<16xf32>
    %18 = vector.shape_cast %17 : vector<16xf32> to vector<16x1xf32>
    %cst_12 = arith.constant 3.200000e+01 : f32
    %19 = vector.broadcast %cst_12 : f32 to vector<16x1xf32>
    %20 = arith.divf %18, %19 : vector<16x1xf32>
    %21 = vector.broadcast %13 : vector<16x1xf32> to vector<16x32xf32>
    %22 = arith.subf %9, %21 : vector<16x32xf32>
    %cst_13 = arith.constant 9.99999996E-13 : f32
    %23 = vector.broadcast %cst_13 : f32 to vector<16x1xf32>
    %24 = arith.addf %20, %23 : vector<16x1xf32>
    %25 = math.rsqrt %24 : vector<16x1xf32>
    %26 = vector.broadcast %25 : vector<16x1xf32> to vector<16x32xf32>
    %27 = arith.mulf %22, %26 : vector<16x32xf32>
    %28 = vector.broadcast %4 : vector<1x32xf32> to vector<16x32xf32>
    %29 = arith.mulf %27, %28 : vector<16x32xf32>
    %30 = vector.broadcast %5 : vector<1x32xf32> to vector<16x32xf32>
    %31 = arith.addf %29, %30 : vector<16x32xf32>
    %c0_14 = arith.constant 0 : index
    %c0_15 = arith.constant 0 : index
    %32 = vector.load %arg4[%c0_14, %c0_15] : memref<16x32xf32, #tpu.memory_space<vmem>>, vector<16x32xf32>
    tpu.vector_store %arg4[%c0_14, %c0_15], %31 {strides = array<i32>} : memref<16x32xf32, #tpu.memory_space<vmem>>, vector<16x32xf32>,
    return
  }
  func.func @transform_0(%arg0: i32) -> (i32, i32) {
    %c0_i32 = arith.constant 0 : i32
    %c0_i32_0 = arith.constant 0 : i32
    return %arg0, %c0_i32 : i32, i32
  }
  func.func @transform_1(%arg0: i32) -> (i32, i32) {
    %c0_i32 = arith.constant 0 : i32
    %c0_i32_0 = arith.constant 0 : i32
    return %arg0, %c0_i32 : i32, i32
  }
  func.func @transform_2(%arg0: i32) -> (i32, i32) {
    %c0_i32 = arith.constant 0 : i32
    %c0_i32_0 = arith.constant 0 : i32
    %c0_i32_1 = arith.constant 0 : i32
    return %c0_i32, %c0_i32_0 : i32, i32
  }
  func.func @transform_3(%arg0: i32) -> (i32, i32) {
    %c0_i32 = arith.constant 0 : i32
    %c0_i32_0 = arith.constant 0 : i32
    return %arg0, %c0_i32 : i32, i32
  }
}

</mosaic_0001>

<bundles_post_ra>
// kernel: tpu_custom_call.1
= control target key start
LH: loop header
LB: loop body
LE: loop exit
PB: predicated region body
PF: predicated region fallthrough
CT: control target
= control target key end

     0   :  { %8 = vsyncpa [#allocation3], 0  ;;  %s373_s0 = inlined_call_operand.hbm [shape: f32[16,32], index: 0, kind: input, shape index: {}]   ;;  %s374_s1 = inlined_call_operand.hbm [shape: f32[16,32], index: 1, kind: input, shape index: {}]   ;;  %s375_s2 = inlined_call_operand.hbm [shape: f32[40,128], index: 2, kind: input, shape index: {}]   ;;  %s376_s3 = inlined_call_operand.hbm [shape: f32[16,32], index: 3, kind: output, shape index: {}]  }
   0x1   :  { %9 = vsyncpa [#allocation6], 0 }
   0x2   :  { %10 = vsyncpa [#allocation4], 0  ;;  %s28_s14 = sshll.u32 %s374_s1, 4  ;;  %s312_s15 = smov [#allocation5]   ;;  %s29_s14 = int_to_ptr.hbm [resolvable:$true] %s28_s14 }
   0x3   :  { %s30_s16 = sshll.u32 %s312_s15, 4  ;;  %s15_s19 = sshll.u32 %s373_s0, 4  ;;  %s31_s16 = int_to_ptr.vmem [resolvable:$true] %s30_s16  ;;  %s16_s19 = int_to_ptr.hbm [resolvable:$true] %s15_s19 }
   0x4   :  { %s313_s20 = smov 128   ;;  %s314_s21 = smov 8  }
   0x5   :  { %36 = dma.hbm_to_vmem [thread:$0]  %s29_s14, 256, %s31_s16, [#allocation6], %s313_s20, %s313_s20, %s314_s21  }
   0x6   :  { %s315_s22 = smov [#allocation2]   ;;  %s41_s1 = sshll.u32 %s375_s2, 4  ;;  %s42_s1 = int_to_ptr.hbm [resolvable:$true] %s41_s1 }
   0x7   :  { %s17_s23 = sshll.u32 %s315_s22, 4  ;;  %s316_s0 = smov [#allocation7]   ;;  %s18_s23 = int_to_ptr.vmem [resolvable:$true] %s17_s23 }
   0x8   :  { %23 = dma.hbm_to_vmem [thread:$0]  %s16_s19, 256, %s18_s23, [#allocation3], %s313_s20, %s313_s20, %s314_s21  }
   0x9   :  { %s43_s26 = sshll.u32 %s316_s0, 4  ;;  %s44_s26 = int_to_ptr.vmem [resolvable:$true] %s43_s26 }
   0xa   :  { %49 = dma.hbm_to_vmem [thread:$0]  %s42_s1, 640, %s44_s26, [#allocation6], %s313_s20, %s313_s20, %s314_s21  }
   0xb   :  { %306 = dma.done.wait [#allocation3], 256  }
   0xc   :  { %307 = vsyncadd [#allocation3], 4294967040 }
   0xd   :  { %308 = dma.done.wait [#allocation6], 896  }
   0xe   :  { %309 = vsyncadd [#allocation6], 4294966400  ;;  %v69_v0 = vld [vmem:[#allocation7 + $0x18] sm:$0xff]  ;;  %v68_v1 = vld [vmem:[#allocation7 + $0x10] sm:$0xff]  ;;  %vm72_vm0 = vcmask 261120   ;;  %s317_s2 = smov 96  }
   0xf   :  { %91 = vmatpush.msra.mxu0 %v69_v0  ;;  %190 = vmatpush.msra.mxu1 %v69_v0  ;;  %v67_v2 = vld [vmem:[#allocation7 + $0x8] sm:$0xff]  ;;  %v66_v3 = vld [vmem:[#allocation7] sm:$0xff]  ;;  %v64_v8 = vld [vmem:[#allocation5] sm:$0xff]  ;;  %s318_s27 = smov 64   ;;  %v319_v17 = vmov 32.0   ;;  %s320_s28 = smov [#allocation8]  }
  0x10   :  { %v62_v4 = vld [vmem:[#allocation2] sm:$0xff]  ;;  %v63_v5 = vld [vmem:[#allocation2 + $0x8] sm:$0xff]  ;;  %v65_v13 = vld [vmem:[#allocation5 + $0x8] sm:$0xff]  ;;  %204 = vrcp.f32 %v319_v17  ;;  %s172_s29 = sshll.u32 %s320_s28, 4  ;;  %s174_s5 = sshll.u32 %s376_s3, 4  ;;  %s173_s29 = int_to_ptr.vmem [resolvable:$true] %s172_s29  ;;  %s175_s5 = int_to_ptr.hbm [resolvable:$true] %s174_s5 }
  0x11   :  { %92 = vmatpush.msra.mxu0 %v68_v1  ;;  %191 = vmatpush.msra.mxu1 %v68_v1  ;;  %v203_v6 = vld [vmem:[#allocation7 + $0x20] ss:$0 sm:$0xff] }
  0x12   :  { %156 = vrot.lane.b32.xlu2 %v203_v6, %s317_s2 }
  0x13   :  { %93 = vmatpush.msra.mxu0 %v67_v2  ;;  %192 = vmatpush.msra.mxu1 %v67_v2 }
  0x15   :  { %94 = vmatpush.msra.mxu0 %v66_v3  ;;  %193 = vmatpush.msra.mxu1 %v66_v3 }
  0x16   :  { %188 = vmatmul.msk.f32.vlgmr.msra.gmra.mxu0 %vm72_vm0, %v62_v4  ;;  %189 = vmatmul.msk.f32.vlgmr.msra.gmra.mxu1 %vm72_vm0, %v63_v5  ;;  %v205_v18 = vpop.eup %204 }
  0x17   :  { %v111_v19 = vmul.f32 32.0, %v205_v18  ;;  %vm115_vm1 = vweird.f32 %v205_v18 }
  0x19   :  { %v112_v20 = vsub.f32 1.0, %v111_v19 }
  0x1a   :  { %161 = vrot.lane.b32.xlu2 %v203_v6, %s318_s27 }
  0x1b   :  { %v113_v21 = vmul.f32 %v205_v18, %v112_v20 }
  0x1d   :  { %v114_v22 = vadd.f32 %v205_v18, %v113_v21 }
  0x1f   :  { %v116_v23 = vsel %vm115_vm1, %v205_v18, %v114_v22 }
  0x6c   :  { %v157_v43 = vpop.permute.xlu2 %156 }
  0x74   :  { %v162_v53 = vpop.permute.xlu2 %161 }
  0x93   :  { %v96_v7 = vpop.f32.mrf.mxu0  ;;  %v99_v9 = vpop.f32.mrf.mxu1 }
  0x94   :  { %v97_v10 = vadd.f32 %v203_v6, %v96_v7  ;;  %v100_v12 = vadd.f32 %v203_v6, %v99_v9 }
  0x96   :  { %v102_v11 = vadd.f32 %v97_v10, %v64_v8  ;;  %v103_v15 = vadd.f32 %v100_v12, %v65_v13 }
  0x98   :  { %v104_v14 = vsel %vm72_vm0, %v102_v11, 0.0  ;;  %v107_v16 = vsel %vm72_vm0, %v103_v15, 0.0 }
  0x99   :  { %105 = vadd.xlane.f32.xlu0 %v104_v14 }
  0xa1   :  { %108 = vadd.xlane.f32.xlu0 %v107_v16 }
 0x10c   :  { %v106_v24 = vpop.xlane.xlu0 %105 }
 0x10d   :  { %v117_v25 = vmul.f32 %v116_v23, %v106_v24 }
 0x10f   :  { %v119_v26 = vsub.f32 %v102_v11, %v117_v25 }
 0x111   :  { %v121_v27 = vmul.f32 %v119_v26, %v119_v26 }
 0x113   :  { %v123_v28 = vsel %vm72_vm0, %v121_v27, 0.0 }
 0x114   :  { %124 = vadd.xlane.f32.xlu1 %v123_v28  ;;  %v109_v29 = vpop.xlane.xlu0 %108 }
 0x115   :  { %v118_v30 = vmul.f32 %v116_v23, %v109_v29 }
 0x117   :  { %v120_v31 = vsub.f32 %v103_v15, %v118_v30 }
 0x119   :  { %v122_v32 = vmul.f32 %v120_v31, %v120_v31 }
 0x11b   :  { %v126_v33 = vsel %vm72_vm0, %v122_v32, 0.0 }
 0x11c   :  { %127 = vadd.xlane.f32.xlu1 %v126_v33 }
 0x187   :  { %v125_v34 = vpop.xlane.xlu1 %124 }
 0x188   :  { %v129_v35 = vmul.f32 %v125_v34, %v116_v23 }
 0x18a   :  { %v131_v36 = vadd.f32 1e-12, %v129_v35 }
 0x18c   :  { %206 = vrsqrt.f32 %v131_v36  ;;  %vm139_vm3 = vweird.f32 %v131_v36 }
 0x18f   :  { %v128_v37 = vpop.xlane.xlu1 %127 }
 0x190   :  { %v130_v38 = vmul.f32 %v128_v37, %v116_v23 }
 0x192   :  { %v207_v39 = vpop.eup %206  ;;  %v132_v40 = vadd.f32 1e-12, %v130_v38 }
 0x193   :  { %v134_v41 = vmul.f32 %v207_v39, %v131_v36  ;;  %vm140_vm2 = vweird.f32 %v207_v39 }
 0x194   :  { %208 = vrsqrt.f32 %v132_v40  ;;  %vm141_vm4 = vmor %vm139_vm3, %vm140_vm2  ;;  %vm149_vm6 = vweird.f32 %v132_v40 }
 0x195   :  { %v135_v42 = vmul.f32 %v207_v39, %v134_v41 }
 0x197   :  { %v136_v44 = vmul.f32 0.5, %v135_v42 }
 0x199   :  { %v137_v45 = vsub.f32 1.5, %v136_v44 }
 0x19a   :  { %v209_v46 = vpop.eup %208 }
 0x19b   :  { %v144_v47 = vmul.f32 %v209_v46, %v132_v40  ;;  %v138_v48 = vmul.f32 %v207_v39, %v137_v45  ;;  %vm150_vm5 = vweird.f32 %v209_v46 }
 0x19c   :  { %vm151_vm7 = vmor %vm149_vm6, %vm150_vm5 }
 0x19d   :  { %v145_v49 = vmul.f32 %v209_v46, %v144_v47  ;;  %v142_v50 = vsel %vm141_vm4, %v207_v39, %v138_v48 }
 0x19e   :  { %v153_v51 = vmul.f32 %v142_v50, %v119_v26 }
 0x19f   :  { %v146_v52 = vmul.f32 0.5, %v145_v49 }
 0x1a0   :  { %v159_v54 = vmul.f32 %v157_v43, %v153_v51 }
 0x1a1   :  { %v147_v55 = vsub.f32 1.5, %v146_v52 }
 0x1a2   :  { %v164_v56 = vadd.f32 %v162_v53, %v159_v54 }
 0x1a3   :  { %v148_v57 = vmul.f32 %v209_v46, %v147_v55 }
 0x1a4   :  { %166 = vst.msk [vmem:[#allocation8] sm:$0xff] %vm72_vm0, %v164_v56 }
 0x1a5   :  { %v152_v58 = vsel %vm151_vm7, %v209_v46, %v148_v57 }
 0x1a6   :  { %v154_v59 = vmul.f32 %v152_v58, %v120_v31 }
 0x1a8   :  { %v160_v60 = vmul.f32 %v157_v43, %v154_v59 }
 0x1aa   :  { %v165_v61 = vadd.f32 %v162_v53, %v160_v60 }
 0x1ac   :  { %167 = vst.msk [vmem:[#allocation8 + $0x8] sm:$0xff] %vm72_vm0, %v165_v61 }
 0x1ad   :  { %180 = dma.vmem_to_hbm [thread:$0]  %s173_s29, 256, %s175_s5, [#allocation4], %s313_s20, %s313_s20, %s314_s21  }
 0x1ae   :  { %310 = dma.done.wait [#allocation4], 256  }
 0x1af   :  { %311 = vsyncadd [#allocation4], 4294967040 }
 0x1b0   :  { %185 = vsyncpa [#allocation3], 1 }
 0x1b1   :  { %186 = vsyncpa [#allocation6], 1 }
 0x1b2   :  { %187 = vsyncpa [#allocation4], 1 }

</bundles_post_ra>
